<compile_context>
chip_gen: v5e
topology: v5e:2x2
jax: 0.10.0
libtpu: 0.0.40
codegen_flags: <defaults>
</compile_context>

<pallas_src>
import jax
import jax.numpy as jnp
from jax import lax
from jax.experimental import pallas as pl
from jax.experimental.pallas import tpu as pltpu


def _biasfree_ln_kernel(x_ref, w_ref, o_ref):
    # x_ref: (nb, C, T)   w_ref: (C, 1)   o_ref: (nb, C, T)
    x = x_ref[...].astype(jnp.float32)
    w = w_ref[...].astype(jnp.float32)            # (C, 1) broadcasts over nb & lanes
    c = x.shape[1]
    inv_c = jnp.float32(1.0 / c)
    mu = jnp.sum(x, axis=1, keepdims=True) * inv_c           # (nb, 1, T)
    xc = x - mu
    var = jnp.sum(xc * xc, axis=1, keepdims=True) * inv_c    # biased, centered
    inv = lax.rsqrt(var + 1e-5)                               # (nb, 1, T)
    # BiasFree: the (un-centered) x is scaled, then multiplied by per-channel weight.
    # Re-read x_ref so the cast stays per-pass (no extra f32 block live for bf16).
    o_ref[...] = (x_ref[...].astype(jnp.float32) * (inv * w)).astype(o_ref.dtype)


def _gen_sizing():
    """(target_block_bytes, vmem_limit_bytes) based on this chip's VMEM capacity."""
    try:
        vmem = int(getattr(pltpu.get_tpu_info(), "vmem_capacity_bytes", 64 << 20))
    except Exception:
        vmem = 64 << 20
    if vmem >= (96 << 20):           # v5e / v6e: 128 MiB physical VMEM
        return 6 << 20, 64 << 20
    return 4 << 20, 40 << 20         # v7x: 64 MiB physical VMEM per TC


def _choose_tiles(B, C, HW, dtype_bytes, target_bytes):
    """Pick (nb, hw_tile): batch-block count and lane-dense spatial tile."""
    per_col = max(1, C * dtype_bytes)
    per_image = per_col * HW
    if HW < 128 or per_image <= target_bytes:
        # Whole spatial extent fits in one block -> block over batch for big DMAs.
        nb = int(max(1, min(B, target_bytes // max(1, per_image))))
        return nb, HW
    nb = 1
    budget = int(max(128, (target_bytes // per_col) // 128 * 128))
    budget = min(budget, (HW // 128) * 128)
    # Prefer the largest multiple-of-128 divisor of HW within budget (no ragged tail).
    best_div = 0
    for t in range(128, budget + 1, 128):
        if HW % t == 0:
            best_div = t
    if best_div:
        return nb, best_div
    # Otherwise avoid a near-empty tail: shrink until tail >= half a tile (or exact).
    t = budget
    while t > 128:
        rem = HW % t
        if rem == 0 or rem >= t // 2:
            break
        t -= 128
    return nb, t


def _ensure_min_steps(B, HW, nb, hw_tile, min_steps=4):
    """v7x has 2 TensorCores: make sure the (parallel) grid has >= min_steps steps."""
    def steps(nb_, t_):
        return pl.cdiv(B, nb_) * pl.cdiv(HW, t_)
    while steps(nb, hw_tile) < min_steps:
        if nb > 1:
            nb = max(1, nb // 2)
            continue
        if hw_tile > 128 and HW >= 128:
            new_t = max(128, (hw_tile // 2) // 128 * 128)
            if new_t == hw_tile:
                break
            hw_tile = new_t
            continue
        break
    return nb, hw_tile


def biasfree_layernorm_nchw(x_nchw, weight):
    """BiasFree LayerNorm over channels of an NCHW tensor (AWUnet usage).

    Equivalent to: rearrange NCHW -> (B, H*W, C), apply BiasFree_LayerNorm over the
    last dim, rearrange back — but done directly in NCHW with no transposes.
    """
    B, C, H, W = x_nchw.shape
    HW = H * W
    x3 = x_nchw.reshape(B, C, HW)                 # free view (row-major contiguous)
    w2 = weight.reshape(C, 1)

    dtype_bytes = jnp.dtype(x_nchw.dtype).itemsize
    target_bytes, vmem_limit = _gen_sizing()
    nb, hw_tile = _choose_tiles(B, C, HW, dtype_bytes, target_bytes)
    nb, hw_tile = _ensure_min_steps(B, HW, nb, hw_tile, min_steps=4)
    grid = (pl.cdiv(B, nb), pl.cdiv(HW, hw_tile))

    cost = pl.CostEstimate(
        flops=7 * B * C * HW,
        transcendentals=B * HW,
        bytes_accessed=2 * B * C * HW * dtype_bytes + C * dtype_bytes,
    )

    y3 = pl.pallas_call(
        _biasfree_ln_kernel,
        out_shape=jax.ShapeDtypeStruct((B, C, HW), x_nchw.dtype),
        grid_spec=pltpu.PrefetchScalarGridSpec(
            num_scalar_prefetch=0,
            grid=grid,
            in_specs=[
                pl.BlockSpec((nb, C, hw_tile), lambda b, j: (b, 0, j)),
                pl.BlockSpec((C, 1), lambda b, j: (0, 0)),
            ],
            out_specs=pl.BlockSpec((nb, C, hw_tile), lambda b, j: (b, 0, j)),
        ),
        compiler_params=pltpu.CompilerParams(
            dimension_semantics=("parallel", "parallel"),
            vmem_limit_bytes=vmem_limit,
        ),
        cost_estimate=cost,
    )(x3, w2)
    return y3.reshape(B, C, H, W)


def _reference(x_nchw, weight):
    # Pure-JAX reference of the PyTorch forward (normalize over channels, i.e. the
    # last dim of the (B, HW, C) token view used in AWUnet).
    x = jnp.transpose(x_nchw, (0, 2, 3, 1)).astype(jnp.float32)
    sigma = jnp.var(x, axis=-1, keepdims=True)  # biased, centered
    y = x / jnp.sqrt(sigma + 1e-5) * weight
    return jnp.transpose(y, (0, 3, 1, 2)).astype(x_nchw.dtype)


if __name__ == "__main__":
    key = jax.random.PRNGKey(0)
    B, C, H, W = 2, 32, 16, 16   # normalized_shape = C = 32, H*W = 256 (lane-dense)
    # Add a nonzero mean so the centered-variance path is actually exercised.
    x = jax.random.normal(key, (B, C, H, W), dtype=jnp.float32) + 3.0

    # Parameter init matches nn.Parameter(torch.ones(normalized_shape))
    weight = jnp.ones((C,), dtype=jnp.float32)

    out = biasfree_layernorm_nchw(x, weight)
    out = jax.block_until_ready(out)

    ref = _reference(x, weight)
    assert out.shape == (B, C, H, W)
    assert jnp.allclose(out, ref, atol=1e-4, rtol=1e-4), "mismatch vs reference"

    print("KERNEL_OK")
</pallas_src>

<mosaic_0001>
module attributes {stable_mosaic.version = 11 : i64} {
  func.func @_biasfree_ln_kernel(%arg0: i32, %arg1: i32, %arg2: memref<1x32x128xf32, #tpu.memory_space<vmem>>, %arg3: memref<32x1xf32, #tpu.memory_space<vmem>>, %arg4: memref<1x32x128xf32, #tpu.memory_space<vmem>>) attributes {dimension_semantics = [#tpu.dimension_semantics<parallel>, #tpu.dimension_semantics<parallel>], iteration_bounds = array<i64: 2, 2>, scalar_prefetch = 0 : i64, scratch_operands = 0 : i64, tpu.core_type = #tpu.core_type<tc>, window_params = [{transform_indices = @transform_0, window_bounds = array<i64: 1, 32, 128>}, {pipeline_mode = #tpu.pipeline_mode<synchronous>, transform_indices = @transform_1, window_bounds = array<i64: 32, 1>}, {transform_indices = @transform_2, window_bounds = array<i64: 1, 32, 128>}]} {
    %c0 = arith.constant 0 : index
    %c0_0 = arith.constant 0 : index
    %c0_1 = arith.constant 0 : index
    %0 = vector.load %arg2[%c0, %c0_0, %c0_1] : memref<1x32x128xf32, #tpu.memory_space<vmem>>, vector<1x32x128xf32>
    %c0_2 = arith.constant 0 : index
    %c0_3 = arith.constant 0 : index
    %1 = vector.load %arg3[%c0_2, %c0_3] : memref<32x1xf32, #tpu.memory_space<vmem>>, vector<32x1xf32>
    %cst = arith.constant dense<0.000000e+00> : vector<1x128xf32>
    %2 = vector.multi_reduction <add>, %0, %cst [1] : vector<1x32x128xf32> to vector<1x128xf32>
    %3 = vector.shape_cast %2 : vector<1x128xf32> to vector<1x1x128xf32>
    %cst_4 = arith.constant 3.125000e-02 : f32
    %4 = vector.broadcast %cst_4 : f32 to vector<1x1x128xf32>
    %5 = arith.mulf %3, %4 : vector<1x1x128xf32>
    %6 = vector.broadcast %5 : vector<1x1x128xf32> to vector<1x32x128xf32>
    %7 = arith.subf %0, %6 : vector<1x32x128xf32>
    %8 = arith.mulf %7, %7 : vector<1x32x128xf32>
    %cst_5 = arith.constant dense<0.000000e+00> : vector<1x128xf32>
    %9 = vector.multi_reduction <add>, %8, %cst_5 [1] : vector<1x32x128xf32> to vector<1x128xf32>
    %10 = vector.shape_cast %9 : vector<1x128xf32> to vector<1x1x128xf32>
    %cst_6 = arith.constant 3.125000e-02 : f32
    %11 = vector.broadcast %cst_6 : f32 to vector<1x1x128xf32>
    %12 = arith.mulf %10, %11 : vector<1x1x128xf32>
    %cst_7 = arith.constant 9.99999974E-6 : f32
    %13 = vector.broadcast %cst_7 : f32 to vector<1x1x128xf32>
    %14 = arith.addf %12, %13 : vector<1x1x128xf32>
    %15 = math.rsqrt %14 : vector<1x1x128xf32>
    %c0_8 = arith.constant 0 : index
    %c0_9 = arith.constant 0 : index
    %c0_10 = arith.constant 0 : index
    %16 = vector.load %arg2[%c0_8, %c0_9, %c0_10] : memref<1x32x128xf32, #tpu.memory_space<vmem>>, vector<1x32x128xf32>
    %17 = vector.shape_cast %1 : vector<32x1xf32> to vector<1x32x1xf32>
    %18 = vector.broadcast %15 : vector<1x1x128xf32> to vector<1x32x128xf32>
    %19 = vector.broadcast %17 : vector<1x32x1xf32> to vector<1x32x128xf32>
    %20 = arith.mulf %18, %19 : vector<1x32x128xf32>
    %21 = arith.mulf %16, %20 : vector<1x32x128xf32>
    %c0_11 = arith.constant 0 : index
    %c0_12 = arith.constant 0 : index
    %c0_13 = arith.constant 0 : index
    %22 = vector.load %arg4[%c0_11, %c0_12, %c0_13] : memref<1x32x128xf32, #tpu.memory_space<vmem>>, vector<1x32x128xf32>
    tpu.vector_store %arg4[%c0_11, %c0_12, %c0_13], %21 {strides = array<i32>} : memref<1x32x128xf32, #tpu.memory_space<vmem>>, vector<1x32x128xf32>,
    return
  }
  func.func @transform_0(%arg0: i32, %arg1: i32) -> (i32, i32, i32) {
    %c0_i32 = arith.constant 0 : i32
    %c0_i32_0 = arith.constant 0 : i32
    return %arg0, %c0_i32, %arg1 : i32, i32, i32
  }
  func.func @transform_1(%arg0: i32, %arg1: i32) -> (i32, i32) {
    %c0_i32 = arith.constant 0 : i32
    %c0_i32_0 = arith.constant 0 : i32
    %c0_i32_1 = arith.constant 0 : i32
    return %c0_i32, %c0_i32_0 : i32, i32
  }
  func.func @transform_2(%arg0: i32, %arg1: i32) -> (i32, i32, i32) {
    %c0_i32 = arith.constant 0 : i32
    %c0_i32_0 = arith.constant 0 : i32
    return %arg0, %c0_i32, %arg1 : i32, i32, i32
  }
}

</mosaic_0001>

<bundles_post_ra>
// kernel: tpu_custom_call.1
= control target key start
LH: loop header
LB: loop body
LE: loop exit
PB: predicated region body
PF: predicated region fallthrough
CT: control target
= control target key end

     0   :  { %7 = vsyncpa [#allocation3], 0  ;;  %s784_s0 = inlined_call_operand.hbm [shape: f32[2,32,256], index: 0, kind: input, shape index: {}]   ;;  %s785_s1 = inlined_call_operand.vmem [shape: f32[32,1], index: 1, kind: input, shape index: {}]   ;;  %s786_s2 = inlined_call_operand.hbm [shape: f32[2,32,256], index: 2, kind: output, shape index: {}]  }
   0x1   :  { %9 = vsyncpa [#allocation3 + $0x1], 0 }
   0x2   :  { %10 = vsyncpa [#allocation4], 0 }
   0x3   :  { %12 = vsyncpa [#allocation4 + $0x1], 0  ;;  %s621_s9 = smov 0   ;;  %s623_s10 = smov 0  }
   0x4   :  { %s625_s11 = smov 0   ;;  %s627_s12 = smov 0  }
   0x5   :  { %s629_s13 = smov 0   ;;  %s631_s14 = smov 0  }
   0x6   :  { %s633_s15 = smov 0   ;;  %s635_s16 = smov 0  }
   0x7 LB: > { %s365_s17 = sadd.s32 4294967295, %s597_s16   ;;  %s366_s18 = sadd.s32 4294967294, %s597_s16   ;;  %s597_s16 = sphi %s635_s16, %s18_s16   ;;  %s593_s15 = sphi %s633_s15, %s803_s15   ;;  %s589_s14 = sphi %s631_s14, %s802_s14   ;;  %s585_s13 = sphi %s629_s13, %s801_s13   ;;  %s581_s12 = sphi %s627_s12, %s800_s12   ;;  %s577_s11 = sphi %s625_s11, %s799_s11   ;;  %s573_s10 = sphi %s623_s10, %s798_s10   ;;  %s569_s9 = sphi %s621_s9, %s797_s9  }
   0x8   : > { %s27_s19 = sadd.s32 1, %s589_s14  ;;  %s30_s20 = sadd.s32 1, %s593_s15 }
   0x9   : > { %p28_p0 = scmp.ge.s32.totalorder %s27_s19, 2  ;;  %s39_s21 = sadd.s32 1, %s577_s11 }
   0xa   : > { %p46_p1 = scmp.ne.s32.totalorder %s577_s11, %s573_s10  ;;  %p47_p2 = scmp.eq.s32.totalorder %s597_s16, 0 }
   0xb   : > { %s805_s19 = smov (%p28_p0, %s27_s19), 0  ;;  %s807_s20 = smov (!%p28_p0, %s30_s20), %s593_s15 }
   0xc   : > { %789 = sst [smem:[#allocation8_spill]] %s805_s19  ;;  %s35_s22 = ssub.s32 %s589_s14, %s805_s19 }
   0xd   : > { %p674_p3 = por %p47_p2, %p46_p1  ;;  %p32_p4 = scmp.ge.s32.totalorder %s807_s20, 2 }
   0xe   : > { %p52_p5 = scmp.ne.s32.totalorder %s573_s10, %s569_s9  ;;  %p53_p6 = scmp.eq.s32.totalorder %s365_s17, 0 }
   0xf   : > { %p99_p7 = scmp.eq.s32.totalorder %s365_s17, 3  ;;  %s809_s20 = smov (%p32_p4, %s807_s20), 0 }
  0x10   : > { %791 = sst [smem:[#allocation9_spill]] %s809_s20  ;;  %p682_p8 = por %p53_p6, %p52_p5 }
  0x11   : > { %p686_p9 = por %p99_p7, %p46_p1  ;;  %s34_s26 = ssub.s32 %s593_s15, %s809_s20 }
  0x12   : > { %p105_p10 = scmp.eq.s32.totalorder %s366_s18, 3  ;;  %s36_s27 = sor.u32 %s35_s22, %s34_s26 }
  0x13   : > { %p37_p11 = scmp.eq.s32.totalorder %s36_s27, 0  ;;  %p392_p13 = scmp.lt.s32.totalorder %s597_s16, 4 }
  0x14   : > { %p692_p12 = por %p105_p10, %p52_p5  ;;  %s128_s29 = sand.u32 1, %s577_s11  }
  0x15   : > { %s699_s30 = scalar_select %p37_p11, %s577_s11, %s39_s21  }
  0x16   : > { %s369_s3 = sshll.u32 %s128_s29, 5  ;;  %s370_s4 = sshll.u32 %s593_s15, 3 }
  0x17   : > { %s136_s5 = sadd.s32 %s589_s14, %s370_s4  ;;  %s132_s6 = scalar_lea.vmem [#allocation2], %s369_s3 }
  0x18   : > { %s141_s7 = sshll.u32 %s132_s6, 4  ;;  %s371_s8 = sshll.u32 %s136_s5, 3  ;;  %s142_s7 = int_to_ptr.vmem [resolvable:$true] %s141_s7 }
  0x19   : > { %s138_s22 = scalar_lea.hbm %s784_s0, %s371_s8  ;;  %p385_p0 = pnand %p392_p13, %p674_p3 }
  0x1a   : > { %s139_s26 = sshll.u32 %s138_s22, 4  ;;  %s129_s27 = scalar_lea.sflag [#allocation3], %s128_s29  ;;  %s140_s26 = int_to_ptr.hbm [resolvable:$true] %s139_s26 }
  0x1b   : > { %s599_s21 = smov 256   ;;  %s600_s20 = smov 128  }
  0x1c   : > { %s601_s19 = smov 8   ;;  %p372_p1 = scmp.ge.s32.totalorder %s597_s16, 1 }
  0x1d   : > { %387 = dma.hbm_to_vmem [thread:$0]  (!%p385_p0), %s140_s26, 512, %s142_s7, %s129_s27, %s599_s21, %s600_s20, %s601_s19  }
  0x1e   : > { %p149_p2 = scmp.lt.s32.totalorder %s597_s16, 5 }
  0x20   : > { %p150_p4 = pnand %p372_p1, %p149_p2 }
  0x21   : > { %s711_s3 = sand.u32 (!%p150_p4), 1, %s573_s10  }
  0x22   : > { %153 = sbr.rel (%p150_p4) target bundleno = 175 (0xaf), region = 28  ;;  %s373_s23 = sshll.u32 (!%p150_p4), %s711_s3, 5 }
  0x23   : > { %s156_s4 = scalar_lea.sflag (!%p150_p4), [#allocation3], %s711_s3  ;;  %s159_s5 = scalar_lea.vmem (!%p150_p4), [#allocation2], %s373_s23 }
  0x27   : > { %560 = dma.done.wait (%p682_p8), %s156_s4, 512  }
  0x28   : > { %562 = vsyncadd (%p682_p8), %s156_s4, 4294966784  ;;  %v602_v0 = vmov 0   ;;  %v187_v1 = vld [vmem:[%s785_s1 + $0x10] sm:$0xff]  ;;  %v185_v2 = vld [vmem:[%s785_s1] sm:$0xff]  ;;  %s376_s18 = sshll.u32 %s585_s13, 3  ;;  %s180_s27 = scalar_lea.vmem [#allocation5], %s373_s23 }
  0x29   : > { %466 = vset.pattern.permute.xlu1 %v602_v0  ;;  %465 = vset.pattern.permute.xlu0 %v602_v0  ;;  %v188_v3 = vld [vmem:[%s785_s1 + $0x18] sm:$0xff]  ;;  %v186_v4 = vld [vmem:[%s785_s1 + $0x8] sm:$0xff]  ;;  %v181_v5 = vld [vmem:[%s159_s5] sm:$0xff]  ;;  %s271_s22 = sadd.s32 %s581_s12, %s376_s18  ;;  %s274_s19 = sshll.u32 %s180_s27, 4  ;;  %s275_s19 = int_to_ptr.vmem [resolvable:$true] %s274_s19 }
  0x2a   : > { %240 = vperm.xlu1 %466, %v187_v1   ;;  %230 = vperm.xlu0 %465, %v185_v2   ;;  %v733_v6 = vld [vmem:[%s159_s5 + $0x8] sm:$0xff]  ;;  %v183_v8 = vld [vmem:[%s159_s5 + $0x10] sm:$0xff]  ;;  %v184_v10 = vld [vmem:[%s159_s5 + $0x18] sm:$0xff]  ;;  %s377_s26 = sshll.u32 %s271_s22, 3  ;;  %s261_s13 = scalar_lea.sflag [#allocation4], %s711_s3 }
  0x2b   : > { %v189_v7 = vadd.f32 %v733_v6, %v181_v5  ;;  %s273_s5 = scalar_lea.hbm %s786_s2, %s377_s26  ;;  %s519_s7 = scalar_lea.hbm %s786_s2, 128 }
  0x2c   : > { %s276_s12 = sshll.u32 %s273_s5, 4  ;;  %s277_s12 = int_to_ptr.hbm [resolvable:$true] %s276_s12 }
  0x2d   : > { %v190_v9 = vadd.f32 %v189_v7, %v183_v8  ;;  %s513_s23 = sshra.s32 %s277_s12, 4  ;;  %s514_s23 = int_to_ptr.hbm [resolvable:$true] %s513_s23 }
  0x2e   : > { %s515_s20 = scalar_lea.hbm %s514_s23, 32  ;;  %p520_p7 = scmp.lt.s32.totalorder %s514_s23, %s786_s2 }
  0x2f   : > { %v191_v11 = vadd.f32 %v190_v9, %v184_v10  ;;  %p516_p3 = scmp.ne.s32.totalorder %s514_s23, %s515_s20  ;;  %p521_p8 = scmp.lt.s32.totalorder %s519_s7, %s515_s20 }
  0x31   : > { %v192_v12 = vrot.slane %v191_v11, 4  ;;  %p517_p5 = pnand %p516_p3, %p686_p9  ;;  %p522_p10 = por %p521_p8, %p520_p7 }
  0x32   : > { %245 = vperm.xlu1 %466, %v188_v3   ;;  %235 = vperm.xlu0 %465, %v186_v4  }
  0x33   : > { %v193_v13 = vadd.f32 %v192_v12, %v191_v11  ;;  %p518_p6 = pneg %p517_p5 }
  0x35   : > { %v194_v14 = vrot.slane %v193_v13, 2  ;;  %p523_p11 = pnand %p522_p10, %p518_p6 }
  0x37   : > { %v195_v15 = vadd.f32 %v194_v14, %v193_v13 }
  0x39   : > { %v196_v16 = vrot.slane %v195_v15, 1 }
  0x3b   : > { %v197_v17 = vadd.f32 %v196_v16, %v195_v15 }
  0x3d   : > { %v198_v18 = vmul.f32 0.03125, %v197_v17 }
  0x3f   : > { %v199_v19 = vsub.f32 %v181_v5, %v198_v18  ;;  %v200_v20 = vsub.f32 %v733_v6, %v198_v18  ;;  %v201_v21 = vsub.f32 %v183_v8, %v198_v18  ;;  %v202_v24 = vsub.f32 %v184_v10, %v198_v18 }
  0x41   : > { %v203_v22 = vmul.f32 %v199_v19, %v199_v19  ;;  %v204_v23 = vmul.f32 %v200_v20, %v200_v20  ;;  %v205_v25 = vmul.f32 %v201_v21, %v201_v21  ;;  %v206_v27 = vmul.f32 %v202_v24, %v202_v24 }
  0x43   : > { %v207_v26 = vadd.f32 %v204_v23, %v203_v22 }
  0x45   : > { %v208_v28 = vadd.f32 %v207_v26, %v205_v25 }
  0x47   : > { %v209_v29 = vadd.f32 %v208_v28, %v206_v27 }
  0x49   : > { %v210_v30 = vrot.slane %v209_v29, 4 }
  0x4b   : > { %v211_v31 = vadd.f32 %v210_v30, %v209_v29 }
  0x4d   : > { %v212_v32 = vrot.slane %v211_v31, 2 }
  0x4f   : > { %v213_v33 = vadd.f32 %v212_v32, %v211_v31 }
  0x51   : > { %v214_v34 = vrot.slane %v213_v33, 1 }
  0x53   : > { %v215_v35 = vadd.f32 %v214_v34, %v213_v33 }
  0x55   : > { %v216_v36 = vmul.f32 0.03125, %v215_v35 }
  0x57   : > { %v217_v37 = vadd.f32 1e-05, %v216_v36 }
  0x59   : > { %467 = vrsqrt.f32 %v217_v37  ;;  %vm224_vm0 = vweird.f32 %v217_v37 }
  0x5f   : > { %v468_v38 = vpop.eup %467 }
  0x60   : > { %v219_v39 = vmul.f32 %v468_v38, %v217_v37  ;;  %vm225_vm1 = vweird.f32 %v468_v38 }
  0x61   : > { %vm226_vm2 = vmor %vm224_vm0, %vm225_vm1 }
  0x62   : > { %v220_v40 = vmul.f32 %v468_v38, %v219_v39 }
  0x64   : > { %v221_v41 = vmul.f32 0.5, %v220_v40 }
  0x66   : > { %v222_v42 = vsub.f32 1.5, %v221_v41 }
  0x68   : > { %v223_v43 = vmul.f32 %v468_v38, %v222_v42 }
  0x6a   : > { %v227_v44 = vsel %vm226_vm2, %v468_v38, %v223_v43 }
  0x9c   : > { %v241_v45 = vpop.permute.xlu1 %240  ;;  %v231_v46 = vpop.permute.xlu0 %230 }
  0x9d   : > { %v250_v47 = vmul.f32 %v241_v45, %v227_v44  ;;  %v248_v48 = vmul.f32 %v231_v46, %v227_v44 }
  0x9f   : > { %v254_v49 = vmul.f32 %v250_v47, %v183_v8  ;;  %v252_v50 = vmul.f32 %v248_v48, %v181_v5 }
  0xa1   : > { %258 = vst [vmem:[%s180_s27 + $0x10] sm:$0xff] %v254_v49 }
  0xa2   : > { %256 = vst [vmem:[%s180_s27] sm:$0xff] %v252_v50 }
  0xa4   : > { %v246_v51 = vpop.permute.xlu1 %245  ;;  %v236_v52 = vpop.permute.xlu0 %235 }
  0xa5   : > { %v251_v53 = vmul.f32 %v246_v51, %v227_v44  ;;  %v249_v54 = vmul.f32 %v236_v52, %v227_v44 }
  0xa7   : > { %v255_v55 = vmul.f32 %v251_v53, %v184_v10  ;;  %v253_v56 = vmul.f32 %v249_v54, %v733_v6 }
  0xa9   : > { %259 = vst [vmem:[%s180_s27 + $0x18] sm:$0xff] %v255_v55 }
  0xaa   : > { %257 = vst [vmem:[%s180_s27 + $0x8] sm:$0xff] %v253_v56 }
  0xab   : > { %526 = shalt.err (!%p523_p11)
}
  0xac   : > { %s603_s3 = smov 128   ;;  %s604_s24 = smov 256  }
  0xad   : > { %s605_s18 = smov 8  }
  0xae   : > { %382 = dma.vmem_to_hbm [thread:$0]  (%p686_p9), %s275_s19, 512, %s277_s12, %s261_s13, %s603_s3, %s604_s24, %s605_s18  }
  0xaf PF: > { %p393_p13 = scmp.ge.s32.totalorder %s597_s16, 2  ;;  %s291_s22 = sand.u32 1, %s569_s9  }
  0xb0   : > { %s292_s26 = scalar_lea.sflag [#allocation4], %s291_s22 }
  0xb1   : > { %p389_p0 = pnand %p393_p13, %p692_p12 }
  0xb3   : > { %p390_p1 = pneg %p389_p0 }
  0xb5   : > { %564 = dma.done.wait (%p390_p1), %s292_s26, 512  }
  0xb6   : > { %566 = vsyncadd (%p390_p1), %s292_s26, 4294966784  ;;  %s18_s16 = sadd.s32 1, %s597_s16   ;;  %s795_s25 = sld [smem:[#allocation8_spill]] }
  0xb7   : > { %p15_p2 = scmp.ge.s32.totalorder %s18_s16, 6   ;;  %s796_s27 = sld [smem:[#allocation9_spill]] }
  0xb8   : > { %s797_s9 = smov %s573_s10  ;;  %s798_s10 = smov %s577_s11 }
  0xb9   : > { %s799_s11 = smov %s699_s30  ;;  %s800_s12 = smov %s589_s14 }
  0xba   : > { %s801_s13 = smov %s593_s15  ;;  %17 = sbr.rel (!%p15_p2) target bundleno = 7 (0x7), region = 73 }
  0xbc   : > { %s802_s14 = smov %s795_s25 }
  0xbd   : > { %s803_s15 = smov %s796_s27 }
  0xbf   :  { %298 = vsyncpa [#allocation3], 1 }
  0xc0   :  { %300 = vsyncpa [#allocation3 + $0x1], 1 }
  0xc1   :  { %301 = vsyncpa [#allocation4], 1 }
  0xc2   :  { %303 = vsyncpa [#allocation4 + $0x1], 1 }

</bundles_post_ra>
